<compile_context>
chip_gen: v6e
topology: v6e:2x2x1
jax: 0.10.0
libtpu: 0.0.40
codegen_flags: <defaults>
</compile_context>

<pallas_src>
import functools

import jax
import jax.numpy as jnp
from jax.experimental import pallas as pl
from jax.experimental.pallas import tpu as pltpu


def _patch_embed_kernel(patches_ref, w_ref, pos_bias_ref, cls_ref, out_ref, *, tb, n):
    # patches_ref : (TB*N, K)      TB whole batches of patch rows
    # w_ref       : (K, E)         projection weight (resident across the grid)
    # pos_bias_ref: (N, E)         pos_embed[1:] + conv bias (f32)
    # cls_ref     : (1, E)         cls_token + pos_embed[0]
    # out_ref     : (TB*(N+1), E)  flat output rows for these TB batches
    y = jnp.dot(patches_ref[...], w_ref[...],
                preferred_element_type=jnp.float32)          # one MXU matmul per step
    cls = cls_ref[...].astype(out_ref.dtype)                 # (1, E)
    pos = pos_bias_ref[...]                                  # (N, E), f32 epilogue
    for t in range(tb):                                      # small static unroll
        base = t * (n + 1)
        out_ref[pl.ds(base, 1), :] = cls
        out_ref[pl.ds(base + 1, n), :] = (
            y[t * n:(t + 1) * n, :] + pos).astype(out_ref.dtype)


def _choose_tb(B, N, K, E, itemsize=4, vmem_budget=24 * 1024 * 1024):
    """Pick batches-per-grid-step: as large as comfortably fits VMEM, with
    8-sublane-aligned blocks whenever the grid has more than one step."""
    for tb in [d for d in range(B, 0, -1) if B % d == 0]:
        # double-buffered input+output blocks + resident weight / pos / cls
        foot = (2 * tb * N * K + 2 * tb * (N + 1) * E + K * E + N * E + E) * itemsize
        aligned = (tb == B) or ((tb * N) % 8 == 0 and (tb * (N + 1)) % 8 == 0)
        if aligned and foot <= vmem_budget:
            return tb
    return B  # tiny shapes always fit; fall back to a single grid step


def patch_embed_forward(x, proj_w, proj_b, cls_token, pos_embed, patch_size,
                        operand_dtype=None):
    """x: (B, C, H, W).  Returns (B, N+1, E), matching the PyTorch module."""
    B, C, H, W = x.shape
    p = patch_size
    Gh, Gw = H // p, W // p
    N = Gh * Gw
    E = proj_w.shape[0]
    K = C * p * p

    # Lossless patch extraction: (B, C, H, W) -> (B*N, K), K in (C, ph, pw) order
    # (matches Conv2d OIHW weight layout).
    patches = (x.reshape(B, C, Gh, p, Gw, p)
                .transpose(0, 2, 4, 1, 3, 5)
                .reshape(B * N, K))

    # Weight as (K, E).  Constant per model -- in real use store it pre-transposed.
    w_mat = proj_w.reshape(E, K).T
    # Fold conv bias into the patch positional embeddings (computed once, outside
    # the hot loop).  The cls row gets pos_embed[0] but no conv bias.
    pos_bias = (pos_embed[0, 1:, :] + proj_b[None, :]).astype(jnp.float32)   # (N, E)
    cls_row = (cls_token[0, 0, :] + pos_embed[0, 0, :]).reshape(1, E)        # (1, E)

    if operand_dtype is not None:   # e.g. jnp.bfloat16 on v6e/v7x
        patches = patches.astype(operand_dtype)
        w_mat = w_mat.astype(operand_dtype)

    TB = _choose_tb(B, N, K, E)
    grid = (B // TB,)
    m_in = TB * N
    m_out = TB * (N + 1)

    kernel = functools.partial(_patch_embed_kernel, tb=TB, n=N)

    out_flat = pl.pallas_call(
        kernel,
        out_shape=jax.ShapeDtypeStruct((B * (N + 1), E), x.dtype),
        grid_spec=pltpu.PrefetchScalarGridSpec(
            num_scalar_prefetch=0,
            grid=grid,
            in_specs=[
                pl.BlockSpec((m_in, K), lambda i: (i, 0)),   # patch rows for TB batches
                pl.BlockSpec((K, E), lambda i: (0, 0)),      # weight, resident
                pl.BlockSpec((N, E), lambda i: (0, 0)),      # pos+bias, resident
                pl.BlockSpec((1, E), lambda i: (0, 0)),      # cls row, resident
            ],
            out_specs=pl.BlockSpec((m_out, E), lambda i: (i, 0)),
        ),
        compiler_params=pltpu.CompilerParams(
            dimension_semantics=("parallel",)),               # megacore-shardable M axis
    )(patches, w_mat, pos_bias, cls_row)

    return out_flat.reshape(B, N + 1, E)


if __name__ == "__main__":
    # Small shapes consistent with the module: img=16, patch=4, in_c=4, embed=32
    B, C, H, W = 2, 4, 16, 16
    patch_size = 4
    embed_size = 32
    num_patches = (H // patch_size) * (W // patch_size)

    key = jax.random.PRNGKey(0)
    k1, k2, k3, k4, k5 = jax.random.split(key, 5)

    x = jax.random.normal(k1, (B, C, H, W), dtype=jnp.float32)
    proj_w = jax.random.normal(
        k2, (embed_size, C, patch_size, patch_size), dtype=jnp.float32) * 0.05
    proj_b = jax.random.normal(k3, (embed_size,), dtype=jnp.float32) * 0.05
    cls_token = jax.random.normal(k4, (1, 1, embed_size), dtype=jnp.float32)
    pos_embed = jax.random.normal(
        k5, (1, num_patches + 1, embed_size), dtype=jnp.float32)

    out = patch_embed_forward(x, proj_w, proj_b, cls_token, pos_embed, patch_size)
    out = jax.block_until_ready(out)

    assert out.shape == (B, num_patches + 1, embed_size), out.shape

    # Sanity check against plain-JAX reference (strided conv == patch matmul).
    ref_conv = jax.lax.conv_general_dilated(
        x, proj_w, window_strides=(patch_size, patch_size), padding="VALID",
        dimension_numbers=("NCHW", "OIHW", "NCHW"))
    ref = ref_conv.reshape(B, embed_size, -1).transpose(0, 2, 1) + proj_b[None, None, :]
    ref = jnp.concatenate(
        [jnp.broadcast_to(cls_token, (B, 1, embed_size)), ref], axis=1) + pos_embed
    assert jnp.allclose(out, ref, atol=1e-4, rtol=1e-4)

    print("KERNEL_OK")
</pallas_src>

<mosaic_0001>
module attributes {stable_mosaic.version = 11 : i64} {
  func.func @_patch_embed_kernel(%arg0: i32, %arg1: memref<32x64xf32, #tpu.memory_space<vmem>>, %arg2: memref<64x32xf32, #tpu.memory_space<vmem>>, %arg3: memref<16x32xf32, #tpu.memory_space<vmem>>, %arg4: memref<1x32xf32, #tpu.memory_space<vmem>>, %arg5: memref<34x32xf32, #tpu.memory_space<vmem>>) attributes {dimension_semantics = [#tpu.dimension_semantics<parallel>], iteration_bounds = array<i64: 1>, scalar_prefetch = 0 : i64, scratch_operands = 0 : i64, tpu.core_type = #tpu.core_type<tc>, window_params = [{transform_indices = @transform_0, window_bounds = array<i64: 32, 64>}, {pipeline_mode = #tpu.pipeline_mode<synchronous>, transform_indices = @transform_1, window_bounds = array<i64: 64, 32>}, {pipeline_mode = #tpu.pipeline_mode<synchronous>, transform_indices = @transform_2, window_bounds = array<i64: 16, 32>}, {pipeline_mode = #tpu.pipeline_mode<synchronous>, transform_indices = @transform_3, window_bounds = array<i64: 1, 32>}, {transform_indices = @transform_4, window_bounds = array<i64: 34, 32>}]} {
    %c0 = arith.constant 0 : index
    %c0_0 = arith.constant 0 : index
    %0 = vector.load %arg1[%c0, %c0_0] : memref<32x64xf32, #tpu.memory_space<vmem>>, vector<32x64xf32>
    %c0_1 = arith.constant 0 : index
    %c0_2 = arith.constant 0 : index
    %1 = vector.load %arg2[%c0_1, %c0_2] : memref<64x32xf32, #tpu.memory_space<vmem>>, vector<64x32xf32>
    %cst = arith.constant dense<0.000000e+00> : vector<32x32xf32>
    %2 = tpu.matmul %0, %1, %cst {dimension_numbers = #tpu.dot_dimension_numbers<[1], [0], [0], [1], [0, 0, 1, 1], [], []>} : vector<32x64xf32>, vector<64x32xf32>, vector<32x32xf32> -> vector<32x32xf32>
    %c0_3 = arith.constant 0 : index
    %c0_4 = arith.constant 0 : index
    %3 = vector.load %arg4[%c0_3, %c0_4] : memref<1x32xf32, #tpu.memory_space<vmem>>, vector<1x32xf32>
    %c0_5 = arith.constant 0 : index
    %c0_6 = arith.constant 0 : index
    %4 = vector.load %arg3[%c0_5, %c0_6] : memref<16x32xf32, #tpu.memory_space<vmem>>, vector<16x32xf32>
    %c0_7 = arith.constant 0 : index
    %c0_8 = arith.constant 0 : index
    %5 = vector.load %arg5[%c0_7, %c0_8] : memref<34x32xf32, #tpu.memory_space<vmem>>, vector<1x32xf32>
    tpu.vector_store %arg5[%c0_7, %c0_8], %3 {strides = array<i32>} : memref<34x32xf32, #tpu.memory_space<vmem>>, vector<1x32xf32>,
    %6 = vector.extract_strided_slice %2 {offsets = [0, 0], sizes = [16, 32], strides = [1, 1]} : vector<32x32xf32> to vector<16x32xf32>
    %7 = arith.addf %6, %4 : vector<16x32xf32>
    %c1 = arith.constant 1 : index
    %c0_9 = arith.constant 0 : index
    %8 = vector.load %arg5[%c1, %c0_9] : memref<34x32xf32, #tpu.memory_space<vmem>>, vector<16x32xf32>
    tpu.vector_store %arg5[%c1, %c0_9], %7 {strides = array<i32>} : memref<34x32xf32, #tpu.memory_space<vmem>>, vector<16x32xf32>,
    %c17 = arith.constant 17 : index
    %c0_10 = arith.constant 0 : index
    %9 = vector.load %arg5[%c17, %c0_10] : memref<34x32xf32, #tpu.memory_space<vmem>>, vector<1x32xf32>
    tpu.vector_store %arg5[%c17, %c0_10], %3 {strides = array<i32>} : memref<34x32xf32, #tpu.memory_space<vmem>>, vector<1x32xf32>,
    %10 = vector.extract_strided_slice %2 {offsets = [16, 0], sizes = [16, 32], strides = [1, 1]} : vector<32x32xf32> to vector<16x32xf32>
    %11 = arith.addf %10, %4 : vector<16x32xf32>
    %c18 = arith.constant 18 : index
    %c0_11 = arith.constant 0 : index
    %12 = vector.load %arg5[%c18, %c0_11] : memref<34x32xf32, #tpu.memory_space<vmem>>, vector<16x32xf32>
    tpu.vector_store %arg5[%c18, %c0_11], %11 {strides = array<i32>} : memref<34x32xf32, #tpu.memory_space<vmem>>, vector<16x32xf32>,
    return
  }
  func.func @transform_0(%arg0: i32) -> (i32, i32) {
    %c0_i32 = arith.constant 0 : i32
    %c0_i32_0 = arith.constant 0 : i32
    return %arg0, %c0_i32 : i32, i32
  }
  func.func @transform_1(%arg0: i32) -> (i32, i32) {
    %c0_i32 = arith.constant 0 : i32
    %c0_i32_0 = arith.constant 0 : i32
    %c0_i32_1 = arith.constant 0 : i32
    return %c0_i32, %c0_i32_0 : i32, i32
  }
  func.func @transform_2(%arg0: i32) -> (i32, i32) {
    %c0_i32 = arith.constant 0 : i32
    %c0_i32_0 = arith.constant 0 : i32
    %c0_i32_1 = arith.constant 0 : i32
    return %c0_i32, %c0_i32_0 : i32, i32
  }
  func.func @transform_3(%arg0: i32) -> (i32, i32) {
    %c0_i32 = arith.constant 0 : i32
    %c0_i32_0 = arith.constant 0 : i32
    %c0_i32_1 = arith.constant 0 : i32
    return %c0_i32, %c0_i32_0 : i32, i32
  }
  func.func @transform_4(%arg0: i32) -> (i32, i32) {
    %c0_i32 = arith.constant 0 : i32
    %c0_i32_0 = arith.constant 0 : i32
    return %arg0, %c0_i32 : i32, i32
  }
}

</mosaic_0001>

<bundles_post_ra>
// kernel: tpu_custom_call.1
= control target key start
LH: loop header
LB: loop body
LE: loop exit
PB: predicated region body
PF: predicated region fallthrough
CT: control target
= control target key end

     0   :  { %vm29_vm0 = vcmask 523264   ;;  %vm130_vm1 = vcmask 253952   ;;  %vm134_vm2 = vcmask 261120   ;;  %s288_s1 = inlined_call_operand.vmem [shape: f32[64,32], index: 1, kind: input, shape index: {}]   ;;  %s289_s0 = inlined_call_operand.vmem [shape: f32[32,64], index: 0, kind: input, shape index: {}]   ;;  %s290_s3 = inlined_call_operand.vmem [shape: f32[1,32], index: 3, kind: input, shape index: {}]   ;;  %s291_s4 = inlined_call_operand.vmem [shape: f32[34,32], index: 4, kind: output, shape index: {}]   ;;  %s292_s2 = inlined_call_operand.vmem [shape: f32[16,32], index: 2, kind: input, shape index: {}]  }
   0x1   :  { %v28_v0 = vld [vmem:[%s288_s1 + $0x38] sm:$0xff]  ;;  %v27_v1 = vld [vmem:[%s288_s1 + $0x30] sm:$0xff]  ;;  %v26_v2 = vld [vmem:[%s288_s1 + $0x28] sm:$0xff] }
   0x2   :  { %162 = vmatprep.subr.mxu0 %v28_v0  ;;  %184 = vmatprep.subr.mxu1 %v28_v0  ;;  %v25_v3 = vld [vmem:[%s288_s1 + $0x20] sm:$0xff]  ;;  %v24_v4 = vld [vmem:[%s288_s1 + $0x18] sm:$0xff]  ;;  %v23_v5 = vld [vmem:[%s288_s1 + $0x10] sm:$0xff] }
   0x3   :  { %163 = vmatpush3.msra.mxu0 %v28_v0  ;;  %192 = vmatpush3.msra.mxu1 %v28_v0  ;;  %v22_v6 = vld [vmem:[%s288_s1 + $0x8] sm:$0xff]  ;;  %v21_v7 = vld [vmem:[%s288_s1] sm:$0xff]  ;;  %v19_v9 = vld [vmem:[%s289_s0 + $0x10] sm:$0xff] }
   0x4   :  { %164 = vmatprep.subr.mxu0 %v27_v1  ;;  %185 = vmatprep.subr.mxu1 %v27_v1  ;;  %v17_v8 = vld [vmem:[%s289_s0] sm:$0xff]  ;;  %v18_v10 = vld [vmem:[%s289_s0 + $0x8] sm:$0xff]  ;;  %v20_v11 = vld [vmem:[%s289_s0 + $0x18] sm:$0xff] }
   0x5   :  { %165 = vmatpush3.msra.mxu0 %v27_v1  ;;  %193 = vmatpush3.msra.mxu1 %v27_v1  ;;  %v127_v12 = vld [vmem:[%s290_s3] sm:$0x1]  ;;  %v129_v13 = vld [vmem:[%s292_s2 + $0x8] sm:$0xff] }
   0x6   :  { %166 = vmatprep.subr.mxu0 %v26_v2  ;;  %186 = vmatprep.subr.mxu1 %v26_v2  ;;  %131 = vst.msk [vmem:[%s291_s4] sm:$0x1] %vm130_vm1, %v127_v12  ;;  %137 = vst.msk [vmem:[%s291_s4 + $0x11] sm:$0x1] %vm130_vm1, %v127_v12  ;;  %v128_v16 = vld [vmem:[%s292_s2] sm:$0xff] }
   0x7   :  { %167 = vmatpush3.msra.mxu0 %v26_v2  ;;  %194 = vmatpush3.msra.mxu1 %v26_v2 }
   0x8   :  { %168 = vmatprep.subr.mxu0 %v25_v3  ;;  %187 = vmatprep.subr.mxu1 %v25_v3 }
   0x9   :  { %169 = vmatpush3.msra.mxu0 %v25_v3  ;;  %195 = vmatpush3.msra.mxu1 %v25_v3 }
   0xa   :  { %170 = vmatprep.subr.mxu0 %v24_v4  ;;  %188 = vmatprep.subr.mxu1 %v24_v4 }
   0xb   :  { %171 = vmatpush3.msra.mxu0 %v24_v4  ;;  %196 = vmatpush3.msra.mxu1 %v24_v4 }
   0xc   :  { %172 = vmatprep.subr.mxu0 %v23_v5  ;;  %189 = vmatprep.subr.mxu1 %v23_v5 }
   0xd   :  { %173 = vmatpush3.msra.mxu0 %v23_v5  ;;  %197 = vmatpush3.msra.mxu1 %v23_v5 }
   0xe   :  { %174 = vmatprep.subr.mxu0 %v22_v6  ;;  %190 = vmatprep.subr.mxu1 %v22_v6 }
   0xf   :  { %175 = vmatpush3.msra.mxu0 %v22_v6  ;;  %198 = vmatpush3.msra.mxu1 %v22_v6 }
  0x10   :  { %176 = vmatprep.subr.mxu0 %v21_v7  ;;  %191 = vmatprep.subr.mxu1 %v21_v7 }
  0x11   :  { %177 = vmatpush3.msra.mxu0 %v21_v7  ;;  %199 = vmatpush3.msra.mxu1 %v21_v7 }
  0x12   :  { %178 = vmatprep.mubr.msk.f32.mxu0 %vm29_vm0, %v17_v8  ;;  %181 = vmatprep.mubr.msk.f32.mxu1 %vm29_vm0, %v19_v9 }
  0x13   :  { %179 = vmatmul.mubr.msk.f32.vlgmr.msra.gmra.mxu0 %vm29_vm0, %v18_v10  ;;  %182 = vmatmul.mubr.msk.f32.vlgmr.msra.gmra.mxu1 %vm29_vm0, %v20_v11 }
  0xd3   :  { %v180_v14 = vpop.f32.mrf.mxu0  ;;  %v183_v15 = vpop.f32.mrf.mxu1 }
  0xd4   :  { %v133_v17 = vadd.f32 %v180_v14, %v129_v13  ;;  %v139_v18 = vadd.f32 %v183_v15, %v129_v13 }
  0xd5   :  { %v108_v19 = vpop.f32.mrf.mxu0  ;;  %v118_v20 = vpop.f32.mrf.mxu1 }
  0xd6   :  { %136 = vst.msk [vmem:[%s291_s4 + $0x9] sm:$0xff] %vm134_vm2, %v133_v17  ;;  %141 = vst.msk [vmem:[%s291_s4 + $0x1a] sm:$0xff] %vm134_vm2, %v139_v18  ;;  %v132_v21 = vadd.f32 %v128_v16, %v108_v19  ;;  %v138_v22 = vadd.f32 %v128_v16, %v118_v20 }
  0xd8   :  { %135 = vst.msk [vmem:[%s291_s4 + $0x1] sm:$0xff] %vm134_vm2, %v132_v21  ;;  %140 = vst.msk [vmem:[%s291_s4 + $0x12] sm:$0xff] %vm134_vm2, %v138_v22 }

</bundles_post_ra>
